<compile_context>
chip_gen: v6e
topology: v6e:2x2x1
jax: 0.10.0
libtpu: 0.0.40
codegen_flags: <defaults>
</compile_context>

<pallas_src>
import jax
import jax.numpy as jnp
from jax.experimental import pallas as pl
from jax.experimental.pallas import tpu as pltpu

_LANE = 128


def _swish_kernel(x_ref, o_ref):
    """Elementwise Swish on one (block_rows, 128) lane-dense tile."""
    x = x_ref[...].astype(jnp.float32)
    denom = 1.0 + jnp.exp(-x)                       # exp -> EUP slot
    y = x * pl.reciprocal(denom, approx=True)       # rcp -> EUP slot (no VPU divide)
    o_ref[...] = y.astype(o_ref.dtype)


def swish(x, *, target_block_bytes=2 * 1024 * 1024):
    """Swish activation for an arbitrarily-shaped array via a Pallas TPU kernel.

    The array is flattened and viewed as a (rows, 128) lane-dense slab.  Rows
    are processed in large sublane-aligned tiles; the last tile may be ragged
    (Pallas drops OOB writes, and OOB reads only produce discarded values,
    which is safe for a purely elementwise op).
    """
    orig_shape = x.shape
    total = x.size
    if total == 0:
        return x

    dtype = x.dtype
    itemsize = jnp.dtype(dtype).itemsize
    # dtype-aware sublane packing: 8 (f32/i32), 16 (bf16/f16), 32 (int8/fp8)
    sublane = max(8, 32 // itemsize)

    # Rows of 128 lanes, rounded up only to the sublane boundary (NOT to a
    # tile multiple) so the pad is at most sublane*128 - 1 elements and is a
    # complete no-op (no HBM copy) when the size is already aligned.
    n_rows = pl.cdiv(total, _LANE)
    n_rows = pl.cdiv(n_rows, sublane) * sublane
    padded_total = n_rows * _LANE

    x_flat = x.reshape(-1)
    if padded_total != total:
        x_flat = jnp.pad(x_flat, (0, padded_total - total))
    x2d = x_flat.reshape(n_rows, _LANE)

    # Tile height: ~target_block_bytes per buffer, sublane-aligned, capped at
    # the slab height.
    block_rows = max(sublane, target_block_bytes // (_LANE * itemsize))
    block_rows = (block_rows // sublane) * sublane
    block_rows = min(block_rows, n_rows)

    grid = (pl.cdiv(n_rows, block_rows),)   # last block may be partial

    out2d = pl.pallas_call(
        _swish_kernel,
        out_shape=jax.ShapeDtypeStruct((n_rows, _LANE), dtype),
        grid_spec=pltpu.PrefetchScalarGridSpec(
            num_scalar_prefetch=0,
            grid=grid,
            in_specs=[pl.BlockSpec((block_rows, _LANE), lambda i: (i, 0))],
            out_specs=pl.BlockSpec((block_rows, _LANE), lambda i: (i, 0)),
        ),
        compiler_params=pltpu.CompilerParams(
            dimension_semantics=("parallel",),        # megacore sharding on v7x
            vmem_limit_bytes=32 * 1024 * 1024,        # headroom over v5e default
        ),
    )(x2d)

    out_flat = out2d.reshape(-1)
    if padded_total != total:
        out_flat = out_flat[:total]
    return out_flat.reshape(orig_shape)


def _reference_swish(x):
    """Pure-JAX reference."""
    return x * jax.nn.sigmoid(x)


if __name__ == "__main__":
    key = jax.random.PRNGKey(0)
    k1, k2, k3, k4 = jax.random.split(key, 4)

    # Shapes consistent with how Swish is used in the original network
    # (activation on NCHW feature maps).  Tolerances are relaxed a touch for
    # the approx (EUP) reciprocal.
    x = jax.random.normal(k1, (2, 4, 16, 16), jnp.float32)
    y = jax.block_until_ready(swish(x))
    assert y.shape == x.shape, y.shape
    assert jnp.allclose(y, _reference_swish(x), atol=1e-2, rtol=1e-2)

    # Ragged flat size (exercises the small boundary pad / slice path).
    x2 = jax.random.normal(k2, (3, 7, 5), jnp.float32)
    y2 = jax.block_until_ready(swish(x2))
    assert y2.shape == x2.shape, y2.shape
    assert jnp.allclose(y2, _reference_swish(x2), atol=1e-2, rtol=1e-2)

    # Multi-block grid with a ragged final block (small tile override).
    x3 = jax.random.normal(k3, (5, 40, 33), jnp.float32)
    y3 = jax.block_until_ready(swish(x3, target_block_bytes=48 * _LANE * 4))
    assert y3.shape == x3.shape, y3.shape
    assert jnp.allclose(y3, _reference_swish(x3), atol=1e-2, rtol=1e-2)

    # bf16 input (exercises the dtype-aware sublane rounding; math in f32).
    x4 = jax.random.normal(k4, (2, 3, 8, 20), jnp.bfloat16)
    y4 = jax.block_until_ready(swish(x4))
    assert y4.shape == x4.shape, y4.shape
    assert jnp.allclose(y4.astype(jnp.float32),
                        _reference_swish(x4.astype(jnp.float32)),
                        atol=3e-2, rtol=3e-2)

    print("KERNEL_OK")
</pallas_src>

<mosaic_0001>
module attributes {stable_mosaic.version = 11 : i64} {
  func.func @_swish_kernel(%arg0: i32, %arg1: memref<16x128xf32, #tpu.memory_space<vmem>>, %arg2: memref<16x128xf32, #tpu.memory_space<vmem>>) attributes {dimension_semantics = [#tpu.dimension_semantics<parallel>], iteration_bounds = array<i64: 1>, scalar_prefetch = 0 : i64, scratch_operands = 0 : i64, tpu.core_type = #tpu.core_type<tc>, window_params = [{transform_indices = @transform_0, window_bounds = array<i64: 16, 128>}, {transform_indices = @transform_1, window_bounds = array<i64: 16, 128>}]} {
    %c0 = arith.constant 0 : index
    %c0_0 = arith.constant 0 : index
    %0 = vector.load %arg1[%c0, %c0_0] : memref<16x128xf32, #tpu.memory_space<vmem>>, vector<16x128xf32>
    %cst = arith.constant 0.000000e+00 : f32
    %1 = vector.broadcast %cst : f32 to vector<16x128xf32>
    %2 = arith.subf %1, %0 : vector<16x128xf32>
    %3 = math.exp %2 : vector<16x128xf32>
    %cst_1 = arith.constant 1.000000e+00 : f32
    %4 = vector.broadcast %cst_1 : f32 to vector<16x128xf32>
    %5 = arith.addf %4, %3 : vector<16x128xf32>
    %6 = tpu.reciprocal %5 {approx = true} : vector<16x128xf32> -> vector<16x128xf32>
    %7 = arith.mulf %0, %6 : vector<16x128xf32>
    %c0_2 = arith.constant 0 : index
    %c0_3 = arith.constant 0 : index
    %8 = vector.load %arg2[%c0_2, %c0_3] : memref<16x128xf32, #tpu.memory_space<vmem>>, vector<16x128xf32>
    tpu.vector_store %arg2[%c0_2, %c0_3], %7 {strides = array<i32>} : memref<16x128xf32, #tpu.memory_space<vmem>>, vector<16x128xf32>,
    return
  }
  func.func @transform_0(%arg0: i32) -> (i32, i32) {
    %c0_i32 = arith.constant 0 : i32
    %c0_i32_0 = arith.constant 0 : i32
    return %arg0, %c0_i32 : i32, i32
  }
  func.func @transform_1(%arg0: i32) -> (i32, i32) {
    %c0_i32 = arith.constant 0 : i32
    %c0_i32_0 = arith.constant 0 : i32
    return %arg0, %c0_i32 : i32, i32
  }
}

</mosaic_0001>

<bundles_post_ra>
// kernel: tpu_custom_call.1
= control target key start
LH: loop header
LB: loop body
LE: loop exit
PB: predicated region body
PF: predicated region fallthrough
CT: control target
= control target key end

     0   :  { %6 = vsyncpa [#allocation3], 0  ;;  %s138_s0 = inlined_call_operand.hbm [shape: f32[16,128], index: 0, kind: input, shape index: {}]   ;;  %s139_s1 = inlined_call_operand.hbm [shape: f32[16,128], index: 1, kind: output, shape index: {}]  }
   0x1   :  { %7 = vsyncpa [#allocation4], 0  ;;  %s112_s6 = smov [#allocation2]  }
   0x2   :  { %s13_s7 = sshll.u32 %s112_s6, 4  ;;  %s14_s7 = int_to_ptr.vmem [resolvable:$true] %s13_s7 }
   0x3   :  { %s76_s8 = scalar_lea.vmem %s14_s7, 256  ;;  %p81_p1 = scmp.lt.s32.totalorder %s14_s7, %s14_s7 }
   0x4   :  { %p77_p0 = scmp.ne.s32.totalorder %s14_s7, %s76_s8  ;;  %p82_p2 = scmp.lt.s32.totalorder %s76_s8, %s76_s8 }
   0x6   :  { %p83_p3 = por %p82_p2, %p81_p1 }
   0x8   :  { %p84_p4 = pnand %p83_p3, %p77_p0 }
   0xa   :  { %87 = shalt.err (!%p84_p4)
}
   0xb   :  { %s113_s9 = smov 128   ;;  %s114_s10 = smov 8  }
   0xc   :  { %19 = dma.hbm_to_vmem [thread:$0]  %s138_s0, 256, %s14_s7, [#allocation3], %s113_s9, %s113_s9, %s114_s10  }
   0xd   :  { %108 = dma.done.wait [#allocation3], 256  }
   0xe   :  { %109 = vsyncadd [#allocation3], 4294967040  ;;  %v23_v0 = vld [vmem:[#allocation2] sm:$0xff]  ;;  %v24_v1 = vld [vmem:[#allocation2 + $0x8] sm:$0xff]  ;;  %s115_s13 = smov [#allocation5]  }
   0xf   :  { %v25_v2 = vsub.f32 0.0, %v23_v0  ;;  %v26_v3 = vsub.f32 0.0, %v24_v1  ;;  %s44_s14 = sshll.u32 %s115_s13, 4  ;;  %s45_s14 = int_to_ptr.vmem [resolvable:$true] %s44_s14 }
  0x10   :  { %s88_s0 = scalar_lea.vmem %s45_s14, 256  ;;  %p93_p6 = scmp.lt.s32.totalorder %s45_s14, %s45_s14 }
  0x11   :  { %v27_v4 = vmul.f32 1.442695, %v25_v2  ;;  %v29_v5 = vmul.f32 1.442695, %v26_v3  ;;  %p89_p5 = scmp.ne.s32.totalorder %s45_s14, %s88_s0  ;;  %p94_p7 = scmp.lt.s32.totalorder %s88_s0, %s88_s0 }
  0x13   :  { %60 = vpow2.f32 %v27_v4  ;;  %p95_p8 = por %p94_p7, %p93_p6 }
  0x14   :  { %62 = vpow2.f32 %v29_v5 }
  0x15   :  { %p96_p9 = pnand %p95_p8, %p89_p5 }
  0x20   :  { %v61_v6 = vpop.eup %60 }
  0x21   :  { %v63_v7 = vpop.eup %62  ;;  %v31_v8 = vadd.f32 1.0, %v61_v6 }
  0x22   :  { %v32_v9 = vadd.f32 1.0, %v63_v7 }
  0x23   :  { %64 = vrcp.f32 %v31_v8 }
  0x24   :  { %66 = vrcp.f32 %v32_v9 }
  0x30   :  { %v65_v10 = vpop.eup %64 }
  0x31   :  { %v67_v11 = vpop.eup %66  ;;  %v35_v12 = vmul.f32 %v65_v10, %v23_v0 }
  0x32   :  { %v36_v13 = vmul.f32 %v67_v11, %v24_v1 }
  0x33   :  { %37 = vst [vmem:[#allocation5] sm:$0xff] %v35_v12 }
  0x34   :  { %38 = vst [vmem:[#allocation5 + $0x8] sm:$0xff] %v36_v13 }
  0x35   :  { %99 = shalt.err (!%p96_p9)
}
  0x36   :  { %50 = dma.vmem_to_hbm [thread:$0]  %s45_s14, 256, %s139_s1, [#allocation4], %s113_s9, %s113_s9, %s114_s10  }
  0x37   :  { %110 = dma.done.wait [#allocation4], 256  }
  0x38   :  { %111 = vsyncadd [#allocation4], 4294967040 }
  0x39   :  { %54 = vsyncpa [#allocation3], 1 }
  0x3a   :  { %55 = vsyncpa [#allocation4], 1 }

</bundles_post_ra>
